<compile_context>
chip_gen: v7x
topology: tpu7x:2x2x1
jax: 0.10.0
libtpu: 0.0.40
codegen_flags: <defaults>
</compile_context>

<pallas_src>
import jax
import jax.numpy as jnp
from jax import lax
from jax.experimental import pallas as pl
from jax.experimental.pallas import tpu as pltpu


def _round_up(n, m):
    return ((n + m - 1) // m) * m


def _vmem_capacity_bytes():
    try:
        return int(pltpu.get_tpu_info().vmem_capacity_bytes)
    except Exception:
        return 64 << 20            # conservative fallback (v7x per-TC VMEM)


def _pick_batch_tile(B, max_tile_b=512, sublane=16):
    """Balanced batch tile: >=2 grid steps when possible (v7x megacore + DMA
    overlap), waste bounded by one sublane group, rows multiple of 16 (bf16)."""
    if B <= sublane:
        return _round_up(B, 8)
    n_tiles = max(2, -(-B // max_tile_b))
    tb = _round_up(-(-B // n_tiles), sublane)
    return max(sublane, min(tb, _round_up(B, sublane)))


# ---------------- kernels ----------------

def _diag_dist_kernel(x_ref, w_ref, proto_ref, psq_ref, out_ref):
    # x:(TB,D) f32   w:(1,D) f32   proto:(Pp,D) bf16   psq:(1,Pp) f32   out:(TB,Pp) f32
    x = x_ref[...]
    xw = x * w_ref[...]                                      # VPU, f32
    x_sq = jnp.sum(xw * x, axis=1, keepdims=True)            # exact f32 row norm
    # cross[b,i] = sum_d (x*|w|)[b,d] * proto[i,d]  -> MXU, bf16 in / f32 acc
    cross = lax.dot_general(
        xw.astype(jnp.bfloat16), proto_ref[...],
        dimension_numbers=(((1,), (1,)), ((), ())),
        preferred_element_type=jnp.float32)                  # (TB, Pp)
    out_ref[...] = jnp.maximum(x_sq + psq_ref[...] - 2.0 * cross, 0.0)


def _matrix_dist_kernel(x_ref, r_ref, protoR_ref, pquad_ref, out_ref):
    # x:(TB,D) f32   R:(D,r) bf16   protoR:(Pp,r) bf16   pquad:(1,Pp) f32   out:(TB,Pp) f32
    xR = jnp.dot(x_ref[...].astype(jnp.bfloat16), r_ref[...],
                 preferred_element_type=jnp.float32)         # (TB, r)  MXU
    x_quad = jnp.sum(xR * xR, axis=1, keepdims=True)         # f32, = x W x^T
    cross = lax.dot_general(
        xR.astype(jnp.bfloat16), protoR_ref[...],
        dimension_numbers=(((1,), (1,)), ((), ())),
        preferred_element_type=jnp.float32)                  # (TB, Pp)  MXU
    out_ref[...] = jnp.maximum(x_quad + pquad_ref[...] - 2.0 * cross, 0.0)


# ---------------- shared launch helper ----------------

def _launch(kernel, x, consts, P, Pp, tb):
    B, D = x.shape
    grid = (pl.cdiv(B, tb),)                 # ragged last tile: OOB rows masked

    in_specs = [pl.BlockSpec((tb, D), lambda i: (i, 0))]     # x: batch-tiled, D full
    for c in consts:
        in_specs.append(pl.BlockSpec(tuple(c.shape), lambda i: (0, 0)))  # resident

    # VMEM accounting: Pallas double-buffers every BlockSpec (including the
    # grid-invariant constants), plus the in-kernel intermediates (xw / xR,
    # bf16 casts, cross).
    def _nbytes(a):
        return int(a.size) * int(a.dtype.itemsize)
    resident = sum(_nbytes(c) for c in consts)
    tile_bytes = tb * D * int(x.dtype.itemsize) + tb * Pp * 4
    interm = tb * (D + Pp) * 4 + tb * D * 2
    vmem_need = 2 * (tile_bytes + resident) + interm
    cap = _vmem_capacity_bytes()
    vmem_limit = int(min(max(2 * vmem_need, 8 << 20), int(cap * 0.75)))

    out = pl.pallas_call(
        kernel,
        out_shape=jax.ShapeDtypeStruct((B, Pp), jnp.float32),
        grid=grid,
        in_specs=in_specs,
        out_specs=pl.BlockSpec((tb, Pp), lambda i: (i, 0)),   # lane-dense columns
        compiler_params=pltpu.CompilerParams(
            dimension_semantics=("parallel",),
            vmem_limit_bytes=vmem_limit),
    )(x, *consts)
    return out[:, :P]


# ---------------- pure-JAX references (also the small-shape fallback) ----------------

def _ref_diag(x, prototypes, relevance):
    w = jnp.abs(relevance)
    diff = x[:, None, :] - prototypes[None, :, :]
    return jnp.sum(diff * diff * w, axis=2)


def _ref_matrix(x, prototypes, relevance):
    W = relevance @ relevance.T
    diff = x[:, None, :] - prototypes[None, :, :]
    return jnp.einsum('bij,jk,bik->bi', diff, W, diff)


# ---------------- wrappers ----------------

def grlvq_forward_diag(x, prototypes, relevance, *, max_tile_b=512, use_kernel=None):
    x = jnp.asarray(x, jnp.float32)
    prototypes = jnp.asarray(prototypes, jnp.float32)
    relevance = jnp.asarray(relevance, jnp.float32)
    B, D = x.shape
    P = prototypes.shape[0]

    if use_kernel is None:
        use_kernel = (B * D * max(P, 1)) >= (1 << 18)
    if not use_kernel:
        # Tiny problem: padding + launch overhead dominates; let XLA fuse it.
        return _ref_diag(x, prototypes, relevance)

    Pp = _round_up(P, 128 if P <= 128 else 256)   # 256-wide N when P > 128
    tb = _pick_batch_tile(B, max_tile_b)

    # Hoisted out of the per-tile loop (exact f32 where it matters):
    w = jnp.abs(relevance)
    w2d = w[None, :]                                                    # (1, D) f32
    proto_bf = jnp.zeros((Pp, D), jnp.bfloat16).at[:P, :].set(
        prototypes.astype(jnp.bfloat16))                                # (Pp, D) bf16
    psq = jnp.sum(prototypes * prototypes * w[None, :], axis=1)         # (P,) exact
    psq_p = jnp.zeros((1, Pp), jnp.float32).at[0, :P].set(psq)

    return _launch(_diag_dist_kernel, x, [w2d, proto_bf, psq_p], P, Pp, tb)


def grlvq_forward_matrix(x, prototypes, relevance, *, max_tile_b=512, use_kernel=None):
    x = jnp.asarray(x, jnp.float32)
    prototypes = jnp.asarray(prototypes, jnp.float32)
    relevance = jnp.asarray(relevance, jnp.float32)   # (D, r); module uses r == D
    B, D = x.shape
    P = prototypes.shape[0]
    r = relevance.shape[1]

    if use_kernel is None:
        use_kernel = (B * D * max(P, 1)) >= (1 << 18)
    if not use_kernel:
        return _ref_matrix(x, prototypes, relevance)

    Pp = _round_up(P, 128 if P <= 128 else 256)
    tb = _pick_batch_tile(B, max_tile_b)

    # R-space formulation: d = ||(x - p) R||^2, never form W = R R^T.
    protoR = prototypes @ relevance                                     # (P, r) f32
    pquad = jnp.sum(protoR * protoR, axis=1)                            # (P,) exact
    r_bf = relevance.astype(jnp.bfloat16)                               # (D, r)
    protoR_bf = jnp.zeros((Pp, r), jnp.bfloat16).at[:P, :].set(
        protoR.astype(jnp.bfloat16))                                    # (Pp, r)
    pquad_p = jnp.zeros((1, Pp), jnp.float32).at[0, :P].set(pquad)

    return _launch(_matrix_dist_kernel, x, [r_bf, protoR_bf, pquad_p], P, Pp, tb)


# ---------------- test ----------------

if __name__ == "__main__":
    key = jax.random.PRNGKey(0)
    ks = jax.random.split(key, 10)

    # --- tiny shapes straight from CustomGRLVQ (small-shape fallback path) ---
    input_dim, n_prototypes, n_classes, batch = 32, 4, 3, 8
    x = jax.random.normal(ks[0], (batch, input_dim), dtype=jnp.float32)
    prototypes = jax.random.normal(ks[1], (n_prototypes, input_dim), dtype=jnp.float32)
    prototype_labels = jax.random.randint(ks[2], (n_prototypes,), 0, n_classes)  # unused in forward()
    rel_diag = jnp.ones((input_dim,), jnp.float32) \
        + 0.1 * jax.random.normal(ks[3], (input_dim,), dtype=jnp.float32)
    rel_mat = jnp.eye(input_dim, dtype=jnp.float32) \
        + 0.05 * jax.random.normal(ks[4], (input_dim, input_dim), dtype=jnp.float32)

    d_diag = grlvq_forward_diag(x, prototypes, rel_diag)
    d_mat = grlvq_forward_matrix(x, prototypes, rel_mat)
    jax.block_until_ready((d_diag, d_mat))
    assert d_diag.shape == (batch, n_prototypes)
    assert d_mat.shape == (batch, n_prototypes)
    assert jnp.allclose(d_diag, _ref_diag(x, prototypes, rel_diag),
                        rtol=1e-4, atol=1e-4), "diag (fallback) mismatch"
    assert jnp.allclose(d_mat, _ref_matrix(x, prototypes, rel_mat),
                        rtol=1e-4, atol=1e-4), "matrix (fallback) mismatch"

    # --- moderate shapes exercising the Pallas kernels (non-divisible B/D/P) ---
    B2, D2, P2 = 200, 160, 24
    x2 = jax.random.normal(ks[5], (B2, D2), dtype=jnp.float32)
    proto2 = jax.random.normal(ks[6], (P2, D2), dtype=jnp.float32)
    rel_d2 = jnp.ones((D2,), jnp.float32) \
        + 0.1 * jax.random.normal(ks[7], (D2,), dtype=jnp.float32)
    rel_m2 = jnp.eye(D2, dtype=jnp.float32) \
        + 0.05 * jax.random.normal(ks[8], (D2, D2), dtype=jnp.float32)

    kd = grlvq_forward_diag(x2, proto2, rel_d2, use_kernel=True)
    km = grlvq_forward_matrix(x2, proto2, rel_m2, use_kernel=True)
    jax.block_until_ready((kd, km))
    assert kd.shape == (B2, P2)
    assert km.shape == (B2, P2)
    # bf16 MXU inputs / f32 accumulation -> loosened (but still meaningful) tolerance.
    assert jnp.allclose(kd, _ref_diag(x2, proto2, rel_d2),
                        rtol=5e-2, atol=0.5), "diag kernel mismatch"
    assert jnp.allclose(km, _ref_matrix(x2, proto2, rel_m2),
                        rtol=5e-2, atol=0.5), "matrix kernel mismatch"

    print("KERNEL_OK")
</pallas_src>

<mosaic_0001>
module attributes {stable_mosaic.version = 11 : i64} {
  func.func @_diag_dist_kernel(%arg0: i32, %arg1: memref<112x160xf32, #tpu.memory_space<vmem>>, %arg2: memref<1x160xf32, #tpu.memory_space<vmem>>, %arg3: memref<128x160xbf16, #tpu.memory_space<vmem>>, %arg4: memref<1x128xf32, #tpu.memory_space<vmem>>, %arg5: memref<112x128xf32, #tpu.memory_space<vmem>>) attributes {dimension_semantics = [#tpu.dimension_semantics<parallel>], iteration_bounds = array<i64: 2>, scalar_prefetch = 0 : i64, scratch_operands = 0 : i64, tpu.core_type = #tpu.core_type<tc>, window_params = [{transform_indices = @transform_0, window_bounds = array<i64: 112, 160>}, {pipeline_mode = #tpu.pipeline_mode<synchronous>, transform_indices = @transform_1, window_bounds = array<i64: 1, 160>}, {pipeline_mode = #tpu.pipeline_mode<synchronous>, transform_indices = @transform_2, window_bounds = array<i64: 128, 160>}, {pipeline_mode = #tpu.pipeline_mode<synchronous>, transform_indices = @transform_3, window_bounds = array<i64: 1, 128>}, {transform_indices = @transform_4, window_bounds = array<i64: 112, 128>}]} {
    %c0 = arith.constant 0 : index
    %c0_0 = arith.constant 0 : index
    %0 = vector.load %arg1[%c0, %c0_0] : memref<112x160xf32, #tpu.memory_space<vmem>>, vector<112x160xf32>
    %c0_1 = arith.constant 0 : index
    %c0_2 = arith.constant 0 : index
    %1 = vector.load %arg2[%c0_1, %c0_2] : memref<1x160xf32, #tpu.memory_space<vmem>>, vector<1x160xf32>
    %2 = vector.broadcast %1 : vector<1x160xf32> to vector<112x160xf32>
    %3 = arith.mulf %0, %2 : vector<112x160xf32>
    %4 = arith.mulf %3, %0 : vector<112x160xf32>
    %cst = arith.constant dense<0.000000e+00> : vector<112xf32>
    %5 = vector.multi_reduction <add>, %4, %cst [1] : vector<112x160xf32> to vector<112xf32>
    %6 = vector.shape_cast %5 : vector<112xf32> to vector<112x1xf32>
    %7 = arith.truncf %3 : vector<112x160xf32> to vector<112x160xbf16>
    %c0_3 = arith.constant 0 : index
    %c0_4 = arith.constant 0 : index
    %8 = vector.load %arg3[%c0_3, %c0_4] : memref<128x160xbf16, #tpu.memory_space<vmem>>, vector<128x160xbf16>
    %cst_5 = arith.constant dense<0.000000e+00> : vector<112x128xf32>
    %9 = tpu.matmul %7, %8, %cst_5 {dimension_numbers = #tpu.dot_dimension_numbers<[1], [1], [0], [0], [0, 0, 1, 0], [], []>} : vector<112x160xbf16>, vector<128x160xbf16>, vector<112x128xf32> -> vector<112x128xf32>
    %c0_6 = arith.constant 0 : index
    %c0_7 = arith.constant 0 : index
    %10 = vector.load %arg4[%c0_6, %c0_7] : memref<1x128xf32, #tpu.memory_space<vmem>>, vector<1x128xf32>
    %11 = vector.broadcast %6 : vector<112x1xf32> to vector<112x128xf32>
    %12 = vector.broadcast %10 : vector<1x128xf32> to vector<112x128xf32>
    %13 = arith.addf %11, %12 : vector<112x128xf32>
    %cst_8 = arith.constant 2.000000e+00 : f32
    %14 = vector.broadcast %cst_8 : f32 to vector<112x128xf32>
    %15 = arith.mulf %14, %9 : vector<112x128xf32>
    %16 = arith.subf %13, %15 : vector<112x128xf32>
    %cst_9 = arith.constant 0.000000e+00 : f32
    %17 = vector.broadcast %cst_9 : f32 to vector<112x128xf32>
    %18 = arith.maximumf %16, %17 : vector<112x128xf32>
    %c0_10 = arith.constant 0 : index
    %c0_11 = arith.constant 0 : index
    %19 = vector.load %arg5[%c0_10, %c0_11] : memref<112x128xf32, #tpu.memory_space<vmem>>, vector<112x128xf32>
    tpu.vector_store %arg5[%c0_10, %c0_11], %18 {strides = array<i32>} : memref<112x128xf32, #tpu.memory_space<vmem>>, vector<112x128xf32>,
    return
  }
  func.func @transform_0(%arg0: i32) -> (i32, i32) {
    %c0_i32 = arith.constant 0 : i32
    %c0_i32_0 = arith.constant 0 : i32
    return %arg0, %c0_i32 : i32, i32
  }
  func.func @transform_1(%arg0: i32) -> (i32, i32) {
    %c0_i32 = arith.constant 0 : i32
    %c0_i32_0 = arith.constant 0 : i32
    %c0_i32_1 = arith.constant 0 : i32
    return %c0_i32, %c0_i32_0 : i32, i32
  }
  func.func @transform_2(%arg0: i32) -> (i32, i32) {
    %c0_i32 = arith.constant 0 : i32
    %c0_i32_0 = arith.constant 0 : i32
    %c0_i32_1 = arith.constant 0 : i32
    return %c0_i32, %c0_i32_0 : i32, i32
  }
  func.func @transform_3(%arg0: i32) -> (i32, i32) {
    %c0_i32 = arith.constant 0 : i32
    %c0_i32_0 = arith.constant 0 : i32
    %c0_i32_1 = arith.constant 0 : i32
    return %c0_i32, %c0_i32_0 : i32, i32
  }
  func.func @transform_4(%arg0: i32) -> (i32, i32) {
    %c0_i32 = arith.constant 0 : i32
    %c0_i32_0 = arith.constant 0 : i32
    return %arg0, %c0_i32 : i32, i32
  }
}

</mosaic_0001>

<bundles_post_ra>
// kernel: tpu_custom_call.1
= control target key start
LH: loop header
LB: loop body
LE: loop exit
PB: predicated region body
PF: predicated region fallthrough
CT: control target
= control target key end

     0   :  { %9 = vsyncpa [#allocation3], 0  ;;  %s1407_s0 = inlined_call_operand.vmem [shape: f32[200,160], index: 0, kind: input, shape index: {}]   ;;  %s1408_s1 = inlined_call_operand.vmem [shape: f32[1,160], index: 1, kind: input, shape index: {}]   ;;  %s1409_s2 = inlined_call_operand.vmem [shape: bf16[128,160], index: 2, kind: input, shape index: {}]   ;;  %s1410_s3 = inlined_call_operand.vmem [shape: f32[1,128], index: 3, kind: input, shape index: {}]   ;;  %s1411_s4 = inlined_call_operand.hbm [shape: f32[200,128], index: 4, kind: output, shape index: {}]  }
   0x1   :  { %11 = vsyncpa [#allocation3 + $0x1], 0  ;;  %s1000_s15 = smov 0   ;;  %s1002_s16 = smov 0  }
   0x2   :  { %s1004_s17 = smov 0   ;;  %s1006_s18 = smov 0  }
   0x3 LB: > { %s1021_s19 = sadd.s32 4294967295, %s970_s18   ;;  %s780_s20 = sadd.s32 4294967294, %s970_s18   ;;  %s970_s18 = sphi %s1006_s18, %s1417_s18   ;;  %s966_s17 = sphi %s1004_s17, %s1416_s17   ;;  %s962_s16 = sphi %s1002_s16, %s1415_s16   ;;  %s958_s15 = sphi %s1000_s15, %s1414_s15  }
   0x4   : > { %s1025_s21 = sadd.s32 1, %s970_s18   ;;  %s113_s22 = sadd.s32 1, %s966_s17 }
   0x5   : > { %s110_s23 = ssub.s32 %s970_s18, %s1025_s21  ;;  %p123_p0 = scmp.ne.s32.totalorder %s966_s17, %s962_s16 }
   0x6   : > { %p111_p1 = scmp.eq.s32.totalorder %s110_s23, 0  ;;  %p124_p2 = scmp.eq.s32.totalorder %s1021_s19, 1 }
   0x7   : > { %p129_p3 = scmp.ne.s32.totalorder %s962_s16, %s958_s15  ;;  %p130_p4 = scmp.eq.s32.totalorder %s780_s20, 1 }
   0x8   : > { %s1036_s24 = scalar_select %p111_p1, %s966_s17, %s113_s22  }
   0x9   : > { %p1038_p5 = por %p124_p2, %p123_p0  ;;  %p1042_p6 = por %p130_p4, %p129_p3 }
   0xa   : > { %p783_p7 = scmp.ge.s32.totalorder %s970_s18, 1  ;;  %p177_p8 = scmp.lt.s32.totalorder %s970_s18, 3 }
   0xc   : > { %p178_p9 = pnand %p783_p7, %p177_p8 }
   0xd   : > { %vm328_vm0 = vcmask (!%p178_p9), 261120   ;;  %v884_v0 = vld [vmem:[%s1409_s2 + $0x4] ss:$8 sps:$4 sm:$0xff] (!%p178_p9)   ;;  %s1052_s29 = smul.u32 (!%p178_p9), 14, %s1021_s19  ;;  %v262_v1 = vlaneseq (!%p178_p9)  ;;  %v886_v2 = vld [vmem:[%s1409_s2] ss:$8 sps:$4 sm:$0xff] (!%p178_p9)  }
   0xe   : > { %181 = sbr.rel (%p178_p9) target bundleno = 351 (0x15f), region = 36  ;;  %802 = vmatprep.subr.msk.bf16.mxu0 (!%p178_p9), %vm328_vm0, %v884_v0  ;;  %827 = vmatprep.subr.msk.bf16.mxu1 (!%p178_p9), %vm328_vm0, %v884_v0  ;;  %v887_v3 = vld [vmem:[%s1409_s2 + $0x14] ss:$8 sps:$4 sm:$0xff] (!%p178_p9)   ;;  %v889_v5 = vld [vmem:[%s1409_s2 + $0x10] ss:$8 sps:$4 sm:$0xff] (!%p178_p9)  }
   0xf   : > { %p215_p10 = scmp.lt.s32.totalorder (!%p178_p9), %s1052_s29, 24  ;;  %533 = vmatpush1.bf16.xpose.msra.mxu0 (!%p178_p9), %v886_v2  ;;  %835 = vmatpush1.bf16.xpose.msra.mxu1 (!%p178_p9), %v886_v2  ;;  %v263_v4 = vshrl.u32 (!%p178_p9), %v262_v1, 7  ;;  %v890_v6 = vld [vmem:[%s1409_s2 + $0x24] ss:$8 sps:$4 sm:$0xff] (!%p178_p9)   ;;  %v260_v10 = vld [vmem:[%s1408_s1] sm:$0x3] (!%p178_p9) }
  0x10   : > { %803 = vmatprep.subr.msk.bf16.mxu0 (!%p178_p9), %vm328_vm0, %v887_v3  ;;  %828 = vmatprep.subr.msk.bf16.mxu1 (!%p178_p9), %vm328_vm0, %v887_v3  ;;  %v892_v16 = vld [vmem:[%s1409_s2 + $0x20] ss:$8 sps:$4 sm:$0xff] (!%p178_p9)   ;;  %v893_v20 = vld [vmem:[%s1409_s2 + $0x34] ss:$8 sps:$4 sm:$0xff] (!%p178_p9)   ;;  %v895_v35 = vld [vmem:[%s1409_s2 + $0x30] ss:$8 sps:$4 sm:$0xff] (!%p178_p9)  }
  0x11   : > { %v268_v7 = vsub.s32 (!%p178_p9), 1, %v263_v4  ;;  %v264_v17 = vsub.s32 (!%p178_p9), 0, %v263_v4  ;;  %v896_v41 = vld [vmem:[%s1409_s2 + $0x44] ss:$8 sps:$4 sm:$0xff] (!%p178_p9)  }
  0x13   : > { %v1084_v11 = vrot.slane (!%p178_p9), %v260_v10, %v268_v7  ;;  %v1111_v23 = vrot.slane (!%p178_p9), %v260_v10, %v264_v17  ;;  %v898_v10 = vld [vmem:[%s1409_s2 + $0x40] ss:$8 sps:$4 sm:$0xff] (!%p178_p9)   ;;  %v899_v17 = vld [vmem:[%s1409_s2 + $0x54] ss:$8 sps:$4 sm:$0xff] (!%p178_p9)  }
  0x15   : > { %s216_s8 = scalar_select %p215_p10, %s1052_s29, 24 }
  0x16   : > { %s707_s20 = ssub.s32 (%p1038_p5), 25, %s1052_s29 }
  0x17   : > { %s825_s9 = sshll.u32 %s216_s8, 4  ;;  %535 = vmatpush1.bf16.xpose.msra.mxu0 %v889_v5  ;;  %836 = vmatpush1.bf16.xpose.msra.mxu1 %v889_v5  ;;  %p708_p11 = scmp.lt.s32.totalorder (%p1038_p5), %s707_s20, 14 }
  0x18   : > { %s1075_s22 = scalar_lea.vmem %s1407_s0, %s825_s9  ;;  %804 = vmatprep.subr.msk.bf16.mxu0 %vm328_vm0, %v890_v6  ;;  %829 = vmatprep.subr.msk.bf16.mxu1 %vm328_vm0, %v890_v6  ;;  %s206_s9 = sand.u32 1, %s962_s16  }
  0x19   : > { %v233_v8 = vld [vmem:[%s1075_s22 + $0x8] sm:$0xff]  ;;  %v235_v9 = vld [vmem:[%s1075_s22 + $0x18] sm:$0xff]  ;;  %v232_v24 = vld [vmem:[%s1075_s22] sm:$0xff]  ;;  %s843_s12 = smul.u32 112, %s206_s9  ;;  %s1346_s14 = scalar_lea.sflag [#allocation3], %s206_s9 }
  0x1a   : > { %v1087_v12 = vld [vmem:[%s1075_s22 + $0x88] sm:$0xff]  ;;  %v1090_v13 = vld [vmem:[%s1075_s22 + $0x98] sm:$0xff]  ;;  %v273_v14 = vmul.f32 %v1084_v11, %v233_v8  ;;  %v275_v15 = vmul.f32 %v1084_v11, %v235_v9  ;;  %v236_v26 = vld [vmem:[%s1075_s22 + $0x20] sm:$0xff]  ;;  %v1135_v36 = vmul.f32 %v1111_v23, %v232_v24 }
  0x1b   : > { %v1099_v18 = vmul.f32 %v1084_v11, %v1087_v12  ;;  %v1103_v19 = vmul.f32 %v1084_v11, %v1090_v13  ;;  %v237_v25 = vld [vmem:[%s1075_s22 + $0x28] sm:$0xff]  ;;  %v234_v27 = vld [vmem:[%s1075_s22 + $0x10] sm:$0xff]  ;;  %v239_v28 = vld [vmem:[%s1075_s22 + $0x38] sm:$0xff]  ;;  %v1128_v33 = vmul.f32 %v1111_v23, %v236_v26  ;;  %s1314_s13 = scalar_lea.vmem [#allocation2], %s843_s12 }
  0x1c   : > { %v386_v21 = vpack.c.bf16 %v275_v15, %v273_v14  ;;  %v238_v29 = vld [vmem:[%s1075_s22 + $0x30] sm:$0xff]  ;;  %v241_v30 = vld [vmem:[%s1075_s22 + $0x48] sm:$0xff]  ;;  %v243_v31 = vld [vmem:[%s1075_s22 + $0x58] sm:$0xff]  ;;  %v1125_v32 = vmul.f32 %v1084_v11, %v237_v25  ;;  %v1138_v37 = vmul.f32 %v1111_v23, %v234_v27  ;;  %v1141_v38 = vmul.f32 %v1084_v11, %v239_v28 }
  0x1d   : > { %v394_v22 = vpack.c.bf16 %v1103_v19, %v1099_v18  ;;  %v240_v34 = vld [vmem:[%s1075_s22 + $0x40] sm:$0xff]  ;;  %v1144_v39 = vmul.f32 %v1111_v23, %v238_v29  ;;  %v242_v40 = vld [vmem:[%s1075_s22 + $0x50] sm:$0xff]  ;;  %v1151_v42 = vmul.f32 %v1084_v11, %v241_v30  ;;  %v1154_v43 = vmul.f32 %v1084_v11, %v243_v31  ;;  %v245_v44 = vld [vmem:[%s1075_s22 + $0x68] sm:$0xff] }
  0x1e   : > { %810 = vmatprep.mubr.msk.bf16.mxu0 %vm328_vm0, %v386_v21  ;;  %v304_v45 = vmul.f32 %v1128_v33, %v236_v26  ;;  %v305_v46 = vmul.f32 %v1125_v32, %v237_v25  ;;  %v1160_v47 = vmul.f32 %v1111_v23, %v240_v34  ;;  %v247_v48 = vld [vmem:[%s1075_s22 + $0x78] sm:$0xff]  ;;  %v300_v49 = vmul.f32 %v1135_v36, %v232_v24  ;;  %v246_v61 = vld [vmem:[%s1075_s22 + $0x70] sm:$0xff]  ;;  %v244_v1 = vld [vmem:[%s1075_s22 + $0x60] sm:$0xff] }
  0x1f   : > { %537 = vmatpush1.bf16.xpose.msra.mxu0 %v892_v16  ;;  %837 = vmatpush1.bf16.xpose.msra.mxu1 %v892_v16  ;;  %v301_v50 = vmul.f32 %v273_v14, %v233_v8  ;;  %v306_v51 = vmul.f32 %v1144_v39, %v238_v29  ;;  %v1166_v52 = vmul.f32 %v1111_v23, %v242_v40  ;;  %v255_v24 = vld [vmem:[%s1075_s22 + $0xb8] sm:$0xff] }
  0x20   : > { %805 = vmatprep.subr.msk.bf16.mxu0 %vm328_vm0, %v893_v20  ;;  %830 = vmatprep.subr.msk.bf16.mxu1 %vm328_vm0, %v893_v20  ;;  %v337_v53 = vsel %vm328_vm0, %v305_v46, 0.0  ;;  %v307_v54 = vmul.f32 %v1141_v38, %v239_v28  ;;  %v302_v55 = vmul.f32 %v1138_v37, %v234_v27  ;;  %v1172_v56 = vmul.f32 %v1084_v11, %v245_v44  ;;  %v250_v20 = vld [vmem:[%s1075_s22 + $0x90] sm:$0xff]  ;;  %v253_v27 = vld [vmem:[%s1075_s22 + $0xa8] sm:$0xff]  ;;  %v259_v46 = vld [vmem:[%s1075_s22 + $0xd8] sm:$0xff] }
  0x21   : > { %814 = vmatprep.mubr.msk.bf16.mxu1 %vm328_vm0, %v394_v22  ;;  %v338_v57 = vadd.f32 %v337_v53, %v304_v45  ;;  %v329_v58 = vsel %vm328_vm0, %v301_v50, 0.0  ;;  %v303_v59 = vmul.f32 %v275_v15, %v235_v9  ;;  %v1178_v60 = vmul.f32 %v1084_v11, %v247_v48  ;;  %v248_v22 = vld [vmem:[%s1075_s22 + $0x80] sm:$0xff] }
  0x22   : > { %v330_v62 = vadd.f32 %v329_v58, %v300_v49  ;;  %v341_v63 = vsel %vm328_vm0, %v307_v54, 0.0  ;;  %v311_v0 = vmul.f32 %v1154_v43, %v243_v31  ;;  %v310_v4 = vmul.f32 %v1166_v52, %v242_v40  ;;  %v252_v45 = vld [vmem:[%s1075_s22 + $0xa0] sm:$0xff]  ;;  %v901_v54 = vld [vmem:[%s1409_s2 + $0x50] ss:$8 sps:$4 sm:$0xff]  }
  0x23   : > { %339 = vadd.xlane.f32.xlu1 %v338_v57  ;;  %v342_v2 = vadd.f32 %v341_v63, %v306_v51  ;;  %v333_v3 = vsel %vm328_vm0, %v303_v59, 0.0  ;;  %v309_v5 = vmul.f32 %v1151_v42, %v241_v30  ;;  %v308_v8 = vmul.f32 %v1160_v47, %v240_v34  ;;  %v902_v59 = vld [vmem:[%s1409_s2 + $0x64] ss:$8 sps:$4 sm:$0xff]   ;;  %v258_v63 = vld [vmem:[%s1075_s22 + $0xd0] sm:$0xff] }
  0x24   : > { %331 = vadd.xlane.f32.xlu0 %v330_v62  ;;  %v334_v6 = vadd.f32 %v333_v3, %v302_v55  ;;  %v349_v7 = vsel %vm328_vm0, %v311_v0, 0.0  ;;  %v315_v9 = vmul.f32 %v1178_v60, %v247_v48  ;;  %v1194_v14 = vmul.f32 %v1111_v23, %v246_v61 }
  0x25   : > { %v345_v15 = vsel %vm328_vm0, %v309_v5, 0.0  ;;  %v313_v16 = vmul.f32 %v1172_v56, %v245_v44  ;;  %v1203_v21 = vmul.f32 %v1111_v23, %v244_v1  ;;  %v350_v25 = vadd.f32 %v349_v7, %v310_v4 }
  0x26   : > { %v314_v26 = vmul.f32 %v1194_v14, %v246_v61  ;;  %v346_v28 = vadd.f32 %v345_v15, %v308_v8  ;;  %v357_v29 = vsel %vm328_vm0, %v315_v9, 0.0  ;;  %v319_v31 = vmul.f32 %v1103_v19, %v1090_v13  ;;  %v254_v19 = vld [vmem:[%s1075_s22 + $0xb0] sm:$0xff] }
  0x27   : > { %539 = vmatpush1.bf16.xpose.msra.mxu0 %v895_v35  ;;  %838 = vmatpush1.bf16.xpose.msra.mxu1 %v895_v35  ;;  %v312_v30 = vmul.f32 %v1203_v21, %v244_v1  ;;  %v1214_v34 = vmul.f32 %v1111_v23, %v250_v20  ;;  %v353_v35 = vsel %vm328_vm0, %v313_v16, 0.0  ;;  %v317_v40 = vmul.f32 %v1099_v18, %v1087_v12  ;;  %v257_v18 = vld [vmem:[%s1075_s22 + $0xc8] sm:$0xff]  ;;  %v256_v1 = vld [vmem:[%s1075_s22 + $0xc0] sm:$0xff] }
  0x28   : > { %806 = vmatprep.subr.msk.bf16.mxu0 %vm328_vm0, %v896_v41  ;;  %831 = vmatprep.subr.msk.bf16.mxu1 %vm328_vm0, %v896_v41  ;;  %v1222_v41 = vmul.f32 %v1111_v23, %v248_v22  ;;  %v1225_v13 = vmul.f32 %v1084_v11, %v255_v24  ;;  %v1229_v44 = vmul.f32 %v1084_v11, %v253_v27  ;;  %v365_v50 = vsel %vm328_vm0, %v319_v31, 0.0 }
  0x29   : > { %343 = vadd.xlane.f32.xlu1 %v342_v2  ;;  %335 = vadd.xlane.f32.xlu0 %v334_v6  ;;  %v358_v48 = vadd.f32 %v357_v29, %v314_v26  ;;  %v318_v12 = vmul.f32 %v1214_v34, %v250_v20  ;;  %v354_v49 = vadd.f32 %v353_v35, %v312_v30  ;;  %v361_v57 = vsel %vm328_vm0, %v317_v40, 0.0  ;;  %v905_v26 = vld [vmem:[%s1409_s2 + $0x74] ss:$8 sps:$4 sm:$0xff]  }
  0x2a   : > { %v316_v51 = vmul.f32 %v1222_v41, %v248_v22  ;;  %v323_v53 = vmul.f32 %v1225_v13, %v255_v24  ;;  %v294_v55 = vmul.f32 %v1111_v23, %v254_v19  ;;  %v321_v58 = vmul.f32 %v1229_v44, %v253_v27  ;;  %v904_v24 = vld [vmem:[%s1409_s2 + $0x60] ss:$8 sps:$4 sm:$0xff]  }
  0x2b   : > { %v292_v61 = vmul.f32 %v1111_v23, %v252_v45  ;;  %v299_v62 = vmul.f32 %v1084_v11, %v259_v46  ;;  %v297_v0 = vmul.f32 %v1084_v11, %v257_v18  ;;  %v366_v2 = vadd.f32 %v365_v50, %v318_v12 }
  0x2c   : > { %v322_v3 = vmul.f32 %v294_v55, %v254_v19  ;;  %v362_v4 = vadd.f32 %v361_v57, %v316_v51  ;;  %v373_v5 = vsel %vm328_vm0, %v323_v53, 0.0  ;;  %v298_v8 = vmul.f32 %v1111_v23, %v258_v63 }
  0x2d   : > { %351 = vadd.xlane.f32.xlu1 %v350_v25  ;;  %347 = vadd.xlane.f32.xlu0 %v346_v28  ;;  %v320_v6 = vmul.f32 %v292_v61, %v252_v45  ;;  %v327_v7 = vmul.f32 %v299_v62, %v259_v46  ;;  %v369_v9 = vsel %vm328_vm0, %v321_v58, 0.0  ;;  %v296_v11 = vmul.f32 %v1111_v23, %v256_v1  ;;  %v907_v28 = vld [vmem:[%s1409_s2 + $0x70] ss:$8 sps:$4 sm:$0xff]  }
  0x2e   : > { %v374_v15 = vadd.f32 %v373_v5, %v322_v3  ;;  %v326_v16 = vmul.f32 %v298_v8, %v258_v63  ;;  %v385_v29 = vpack.c.bf16 %v1138_v37, %v1135_v36  ;;  %v393_v30 = vpack.c.bf16 %v1214_v34, %v1222_v41 }
  0x2f   : > { %541 = vmatpush1.bf16.xpose.msra.mxu0 %v898_v10  ;;  %839 = vmatpush1.bf16.xpose.msra.mxu1 %v898_v10  ;;  %v325_v10 = vmul.f32 %v297_v0, %v257_v18  ;;  %v381_v20 = vsel %vm328_vm0, %v327_v7, 0.0  ;;  %v324_v22 = vmul.f32 %v296_v11, %v256_v1  ;;  %v388_v31 = vpack.c.bf16 %v1141_v38, %v1125_v32 }
  0x30   : > { %807 = vmatprep.subr.msk.bf16.mxu0 %vm328_vm0, %v899_v17  ;;  %832 = vmatprep.subr.msk.bf16.mxu1 %vm328_vm0, %v899_v17  ;;  %v370_v17 = vadd.f32 %v369_v9, %v320_v6  ;;  %v382_v23 = vadd.f32 %v381_v20, %v326_v16  ;;  %v396_v35 = vpack.c.bf16 %v1225_v13, %v1229_v44 }
  0x31   : > { %359 = vadd.xlane.f32.xlu1 %v358_v48  ;;  %355 = vadd.xlane.f32.xlu0 %v354_v49  ;;  %v377_v25 = vsel %vm328_vm0, %v325_v10, 0.0  ;;  %v387_v40 = vpack.c.bf16 %v1144_v39, %v1128_v33  ;;  %v395_v36 = vpack.c.bf16 %v294_v55, %v292_v61  ;;  %v390_v37 = vpack.c.bf16 %v1154_v43, %v1151_v42 }
  0x32   : > { %v378_v27 = vadd.f32 %v377_v25, %v324_v22  ;;  %v398_v34 = vpack.c.bf16 %v299_v62, %v297_v0  ;;  %v389_v32 = vpack.c.bf16 %v1166_v52, %v1160_v47  ;;  %v397_v38 = vpack.c.bf16 %v298_v8, %v296_v11 }
  0x33   : > { %v392_v41 = vpack.c.bf16 %v1178_v60, %v1172_v56  ;;  %v391_v33 = vpack.c.bf16 %v1194_v14, %v1203_v21  ;;  %v1306_v60 = vld [vmem:[%s1410_s3] ss:$0 sm:$0xff] }
  0x35   : > { %367 = vadd.xlane.f32.xlu1 %v366_v2  ;;  %363 = vadd.xlane.f32.xlu0 %v362_v4 }
  0x37   : > { %543 = vmatpush1.bf16.xpose.msra.mxu0 %v901_v54  ;;  %840 = vmatpush1.bf16.xpose.msra.mxu1 %v901_v54 }
  0x38   : > { %808 = vmatprep.subr.msk.bf16.mxu0 %vm328_vm0, %v902_v59  ;;  %833 = vmatprep.subr.msk.bf16.mxu1 %vm328_vm0, %v902_v59 }
  0x39   : > { %375 = vadd.xlane.f32.xlu1 %v374_v15  ;;  %371 = vadd.xlane.f32.xlu0 %v370_v17 }
  0x3d   : > { %383 = vadd.xlane.f32.xlu1 %v382_v23  ;;  %379 = vadd.xlane.f32.xlu0 %v378_v27 }
  0x3f   : > { %545 = vmatpush1.bf16.xpose.msra.mxu0 %v904_v24  ;;  %841 = vmatpush1.bf16.xpose.msra.mxu1 %v904_v24 }
  0x40   : > { %809 = vmatprep.subr.msk.bf16.mxu0 %vm328_vm0, %v905_v26  ;;  %834 = vmatprep.subr.msk.bf16.mxu1 %vm328_vm0, %v905_v26 }
  0x47   : > { %547 = vmatpush1.bf16.xpose.msra.mxu0 %v907_v28  ;;  %842 = vmatpush1.bf16.xpose.msra.mxu1 %v907_v28 }
  0x4e   : > { %565 = vmatmul.mubr.bf16.vlgmr.msra.gmra.mrb[0].mxu0 %v385_v29  ;;  %597 = vmatmul.mubr.bf16.vlgmr.msra.gmra.mrb[0].mxu1 %v393_v30 }
  0x4f   : > { %811 = vmatprep.mubr.msk.bf16.mxu0 %vm328_vm0, %v388_v31  ;;  %815 = vmatprep.mubr.msk.bf16.mxu1 %vm328_vm0, %v396_v35 }
  0x56   : > { %573 = vmatmul.mubr.bf16.gmra.mrb[4].mxu0 %v387_v40  ;;  %605 = vmatmul.mubr.bf16.gmra.mrb[4].mxu1 %v395_v36 }
  0x57   : > { %812 = vmatprep.mubr.msk.bf16.mxu0 %vm328_vm0, %v390_v37  ;;  %816 = vmatprep.mubr.msk.bf16.mxu1 %vm328_vm0, %v398_v34 }
  0x5e   : > { %581 = vmatmul.mubr.bf16.gmra.mrb[8].mxu0 %v389_v32  ;;  %613 = vmatmul.mubr.bf16.gmra.mrb[8].mxu1 %v397_v38 }
  0x5f   : > { %813 = vmatprep.mubr.msk.bf16.mxu0 %vm328_vm0, %v392_v41 }
  0x66   : > { %589 = vmatmul.mubr.bf16.gmra.mrb[12].mxu0 %v391_v33 }
  0xb0   : > { %v340_v42 = vpop.xlane.xlu1 %339 }
  0xb1   : > { %v332_v39 = vpop.xlane.xlu0 %331  ;;  %v630_v11 = vadd.f32 %v1306_v60, %v340_v42 }
  0xb2   : > { %v628_v44 = vadd.f32 %v1306_v60, %v332_v39 }
  0xb6   : > { %v336_v43 = vpop.xlane.xlu0 %335  ;;  %v344_v13 = vpop.xlane.xlu1 %343 }
  0xb7   : > { %v629_v12 = vadd.f32 %v1306_v60, %v336_v43  ;;  %v631_v24 = vadd.f32 %v1306_v60, %v344_v13 }
  0xba   : > { %v1295_v19 = vpop.xlane.xlu0 %347  ;;  %v1297_v47 = vpop.xlane.xlu1 %351 }
  0xbb   : > { %v632_v43 = vadd.f32 %v1306_v60, %v1295_v19 }
  0xbe   : > { %v1299_v52 = vpop.xlane.xlu0 %355  ;;  %v1301_v56 = vpop.xlane.xlu1 %359 }
  0xc2   : > { %v364_v14 = vpop.xlane.xlu0 %363  ;;  %v368_v21 = vpop.xlane.xlu1 %367 }
  0xc3   : > { %v636_v45 = vadd.f32 %v1306_v60, %v364_v14  ;;  %v637_v53 = vadd.f32 %v1306_v60, %v368_v21 }
  0xc6   : > { %v372_v0 = vpop.xlane.xlu0 %371  ;;  %v376_v5 = vpop.xlane.xlu1 %375 }
  0xc7   : > { %v638_v8 = vadd.f32 %v1306_v60, %v372_v0  ;;  %v639_v22 = vadd.f32 %v1306_v60, %v376_v5 }
  0xca   : > { %v380_v35 = vpop.xlane.xlu0 %379  ;;  %v384_v32 = vpop.xlane.xlu1 %383 }
  0xcb   : > { %v640_v33 = vadd.f32 %v1306_v60, %v380_v35 }
 0x121   : > { %v566_v46 = vpop.f32.mrb[0].mxu0  ;;  %v598_v48 = vpop.f32.mrb[0].mxu1 }
 0x122   : > { %v642_v18 = vmul.f32 2.0, %v566_v46  ;;  %v568_v49 = vpop.f32.mrb[1].mxu0  ;;  %v650_v50 = vmul.f32 2.0, %v598_v48  ;;  %v600_v51 = vpop.f32.mrb[1].mxu1  ;;  %v633_v46 = vadd.f32 %v1306_v60, %v1297_v47 }
 0x123   : > { %v569_v54 = vpop.f32.mrb[2].mxu0  ;;  %v601_v55 = vpop.f32.mrb[2].mxu1 }
 0x124   : > { %v656_v57 = vsub.f32 %v628_v44, %v642_v18  ;;  %v643_v58 = vmul.f32 2.0, %v569_v54  ;;  %v571_v59 = vpop.f32.mrb[3].mxu0  ;;  %v651_v61 = vmul.f32 2.0, %v601_v55  ;;  %v603_v62 = vpop.f32.mrb[3].mxu1  ;;  %v664_v63 = vsub.f32 %v636_v45, %v650_v50 }
 0x125   : > { %v641_v45 = vadd.f32 %v1306_v60, %v384_v32  ;;  %v634_v62 = vadd.f32 %v1306_v60, %v1299_v52 }
 0x126   : > { %v670_v1 = vmax.f32 %v656_v57, 0.0  ;;  %v657_v2 = vsub.f32 %v629_v12, %v643_v58  ;;  %v665_v3 = vsub.f32 %v637_v53, %v651_v61  ;;  %v678_v4 = vmax.f32 %v664_v63, 0.0 }
 0x128   : > { %684 = vst [vmem:[%s1314_s13] sm:$0xff] %v670_v1  ;;  %v671_v6 = vmax.f32 %v657_v2, 0.0  ;;  %v679_v7 = vmax.f32 %v665_v3, 0.0  ;;  %692 = vst [vmem:[%s1314_s13 + $0x40] sm:$0xff] %v678_v4  ;;  %v635_v2 = vadd.f32 %v1306_v60, %v1301_v56 }
 0x129   : > { %v574_v9 = vpop.f32.mrb[4].mxu0  ;;  %v606_v10 = vpop.f32.mrb[4].mxu1 }
 0x12a   : > { %685 = vst [vmem:[%s1314_s13 + $0x8] sm:$0xff] %v671_v6  ;;  %693 = vst [vmem:[%s1314_s13 + $0x48] sm:$0xff] %v679_v7  ;;  %v644_v15 = vmul.f32 2.0, %v574_v9  ;;  %v576_v16 = vpop.f32.mrb[5].mxu0  ;;  %v652_v17 = vmul.f32 2.0, %v606_v10  ;;  %v608_v20 = vpop.f32.mrb[5].mxu1 }
 0x12b   : > { %v577_v25 = vpop.f32.mrb[6].mxu0  ;;  %v609_v26 = vpop.f32.mrb[6].mxu1 }
 0x12c   : > { %v658_v23 = vsub.f32 %v630_v11, %v644_v15  ;;  %v645_v27 = vmul.f32 2.0, %v577_v25  ;;  %v579_v28 = vpop.f32.mrb[7].mxu0  ;;  %v653_v29 = vmul.f32 2.0, %v609_v26  ;;  %v611_v30 = vpop.f32.mrb[7].mxu1  ;;  %v666_v31 = vsub.f32 %v638_v8, %v652_v17 }
 0x12e   : > { %v672_v40 = vmax.f32 %v658_v23, 0.0  ;;  %v659_v36 = vsub.f32 %v631_v24, %v645_v27  ;;  %v667_v37 = vsub.f32 %v639_v22, %v653_v29  ;;  %v680_v34 = vmax.f32 %v666_v31, 0.0 }
 0x130   : > { %686 = vst [vmem:[%s1314_s13 + $0x10] sm:$0xff] %v672_v40  ;;  %v673_v38 = vmax.f32 %v659_v36, 0.0  ;;  %v681_v41 = vmax.f32 %v667_v37, 0.0  ;;  %694 = vst [vmem:[%s1314_s13 + $0x50] sm:$0xff] %v680_v34 }
 0x131   : > { %v582_v39 = vpop.f32.mrb[8].mxu0  ;;  %v614_v42 = vpop.f32.mrb[8].mxu1 }
 0x132   : > { %687 = vst [vmem:[%s1314_s13 + $0x18] sm:$0xff] %v673_v38  ;;  %695 = vst [vmem:[%s1314_s13 + $0x58] sm:$0xff] %v681_v41  ;;  %v646_v13 = vmul.f32 2.0, %v582_v39  ;;  %v584_v14 = vpop.f32.mrb[9].mxu0  ;;  %v654_v21 = vmul.f32 2.0, %v614_v42  ;;  %v616_v44 = vpop.f32.mrb[9].mxu1 }
 0x133   : > { %v585_v48 = vpop.f32.mrb[10].mxu0  ;;  %v617_v12 = vpop.f32.mrb[10].mxu1 }
 0x134   : > { %v660_v18 = vsub.f32 %v632_v43, %v646_v13  ;;  %v647_v49 = vmul.f32 2.0, %v585_v48  ;;  %v587_v19 = vpop.f32.mrb[11].mxu0  ;;  %v655_v50 = vmul.f32 2.0, %v617_v12  ;;  %v619_v51 = vpop.f32.mrb[11].mxu1  ;;  %v668_v53 = vsub.f32 %v640_v33, %v654_v21 }
 0x136   : > { %v674_v54 = vmax.f32 %v660_v18, 0.0  ;;  %v661_v55 = vsub.f32 %v633_v46, %v647_v49  ;;  %v669_v57 = vsub.f32 %v641_v45, %v655_v50  ;;  %v682_v58 = vmax.f32 %v668_v53, 0.0 }
 0x138   : > { %688 = vst [vmem:[%s1314_s13 + $0x20] sm:$0xff] %v674_v54  ;;  %v675_v59 = vmax.f32 %v661_v55, 0.0  ;;  %v683_v61 = vmax.f32 %v669_v57, 0.0  ;;  %696 = vst [vmem:[%s1314_s13 + $0x60] sm:$0xff] %v682_v58 }
 0x139   : > { %v590_v47 = vpop.f32.mrb[12].mxu0 }
 0x13a   : > { %689 = vst [vmem:[%s1314_s13 + $0x28] sm:$0xff] %v675_v59  ;;  %697 = vst [vmem:[%s1314_s13 + $0x68] sm:$0xff] %v683_v61  ;;  %v648_v63 = vmul.f32 2.0, %v590_v47  ;;  %v592_v0 = vpop.f32.mrb[13].mxu0 }
 0x13b   : > { %v593_v1 = vpop.f32.mrb[14].mxu0 }
 0x13c   : > { %v662_v3 = vsub.f32 %v634_v62, %v648_v63  ;;  %v649_v4 = vmul.f32 2.0, %v593_v1  ;;  %v595_v5 = vpop.f32.mrb[15].mxu0  ;;  %705 = sbr.rel (!%p1038_p5) target bundleno = 351 (0x15f), region = 40 }
 0x13e   : > { %v676_v6 = vmax.f32 %v662_v3, 0.0  ;;  %v663_v7 = vsub.f32 %v635_v2, %v649_v4 }
 0x140   : > { %690 = vst [vmem:[%s1314_s13 + $0x30] sm:$0xff] %v676_v6  ;;  %v677_v8 = vmax.f32 %v663_v7, 0.0 }
 0x142   : > { %691 = vst [vmem:[%s1314_s13 + $0x38] sm:$0xff] %v677_v8 }
 0x143   : > { %s1419_s20 = smov (!%p708_p11, %s707_s20), 14 }
 0x144   : > { %s1351_s23 = sshll.u32 %s1419_s20, 7 }
 0x145   : > { %s712_s27 = ssub.s32 1792, %s1351_s23 }
 0x146   : > { %713 = vsyncadd %s1346_s14, %s712_s27  ;;  %p819_p12 = scmp.ne.s32.totalorder %s1351_s23, 0  ;;  %s826_s28 = smul.u32 1792, %s1021_s19 }
 0x147   : > { %s718_s22 = sshll.u32 %s1314_s13, 4  ;;  %s972_s6 = smov [#allocation2]   ;;  %s1363_s22 = int_to_ptr.vmem [resolvable:$true] %s718_s22 }
 0x148   : > { %s1361_s5 = scalar_lea.hbm %s1411_s4, %s826_s28  ;;  %s908_s29 = scalar_lea.vmem %s1363_s22, %s1351_s23 }
 0x149   : > { %p909_p13 = scmp.ne.s32.totalorder %s1363_s22, %s908_s29  ;;  %s912_s7 = sshll.u32 %s972_s6, 4  ;;  %s913_s7 = int_to_ptr.vmem [resolvable:$false] %s912_s7 }
 0x14a   : > { %s914_s19 = scalar_lea.vmem %s913_s7, 3584  ;;  %p915_p2 = scmp.lt.s32.totalorder %s1363_s22, %s913_s7 }
 0x14b   : > { %p910_p0 = pnand %p909_p13, %p819_p12  ;;  %p916_p3 = scmp.lt.s32.totalorder %s914_s19, %s908_s29 }
 0x14d   : > { %p911_p1 = pneg %p910_p0  ;;  %p917_p4 = por %p916_p3, %p915_p2 }
 0x14f   : > { %p918_p5 = pnand %p917_p4, %p911_p1 }
 0x151   : > { %921 = shalt.err (!%p918_p5)
}
 0x152   : > { %s922_s8 = scalar_lea.hbm %s1361_s5, %s1351_s23  ;;  %s926_s11 = scalar_lea.hbm %s1411_s4, 3200 }
 0x153   : > { %p923_p7 = scmp.ne.s32.totalorder %s1361_s5, %s922_s8  ;;  %p927_p10 = scmp.lt.u32.totalorder %s1361_s5, %s1411_s4 }
 0x154   : > { %p928_p11 = scmp.lt.u32.totalorder %s926_s11, %s922_s8  ;;  %p930_p0 = scmp.lt.u32.totalorder %s922_s8, %s1361_s5 }
 0x155   : > { %p924_p8 = pnand %p923_p7, %p819_p12 }
 0x156   : > { %p929_p13 = por %p928_p11, %p927_p10 }
 0x157   : > { %p925_p9 = pneg %p924_p8 }
 0x158   : > { %p931_p1 = por %p930_p0, %p929_p13 }
 0x15a   : > { %p932_p2 = pnand %p931_p1, %p925_p9 }
 0x15c   : > { %935 = shalt.err (!%p932_p2)
}
 0x15d   : > { %s973_s20 = smov 128   ;;  %s974_s27 = smov 8  }
 0x15e   : > { %724 = dma.vmem_to_hbm [thread:$0]  (%p819_p12), %s1363_s22, %s1351_s23, %s1361_s5, %s1346_s14, %s973_s20, %s973_s20, %s974_s27  }
 0x15f PF: > { %p849_p3 = scmp.ge.s32.totalorder %s970_s18, 2  ;;  %s733_s28 = sand.u32 1, %s958_s15  }
 0x160   : > { %s734_s25 = scalar_lea.sflag [#allocation3], %s733_s28 }
 0x161   : > { %p846_p4 = pnand %p849_p3, %p1042_p6 }
 0x163   : > { %953 = dma.done.wait (!%p846_p4), %s734_s25, 1792  }
 0x164   : > { %955 = vsyncadd (!%p846_p4), %s734_s25, 4294965504  ;;  %p14_p5 = scmp.ge.s32.totalorder %s1025_s21, 4   ;;  %s1414_s15 = smov %s962_s16 }
 0x165   : > { %s1415_s16 = smov %s966_s17  ;;  %s1416_s17 = smov %s1036_s24 }
 0x166   : > { %s1417_s18 = smov %s1025_s21  ;;  %16 = sbr.rel (!%p14_p5) target bundleno = 3 (0x3), region = 71 }
 0x16d   :  { %739 = vsyncpa [#allocation3], 1 }
 0x16e   :  { %741 = vsyncpa [#allocation3 + $0x1], 1 }

</bundles_post_ra>
